<compile_context>
chip_gen: v7x
topology: tpu7x:2x2x1
jax: 0.10.0
libtpu: 0.0.40
codegen_flags: <defaults>
</compile_context>

<pallas_src>
import jax
import jax.numpy as jnp
from jax.experimental import pallas as pl
from jax.experimental.pallas import tpu as pltpu

_TARGET_BLOCK_BYTES = 2 * 1024 * 1024   # per-plane block (~2 MiB f32)
_SMALL_BYTES = 512 * 1024               # below this: single whole-array block
_LANE_CHOICES = (2048, 1024, 512, 256, 128)
_VMEM_LIMIT = 32 * 1024 * 1024          # 2 bufs x (2 in + 2 out) x 2 MiB = 16 MiB used


def _prelu_kernel(alpha_ref, re_ref, im_ref, yre_ref, yim_ref):
    """PReLU applied independently to the real and imaginary f32 planes."""
    a = alpha_ref[0]
    re = re_ref[...]
    im = im_ref[...]
    # NOTE: jnp.where sends -0.0 down the >= 0 branch (result -0.0) whereas
    # torch's max/min formulation yields alpha * -0.0; both compare equal to 0.
    yre_ref[...] = jnp.where(re >= 0, re, a * re)
    yim_ref[...] = jnp.where(im >= 0, im, a * im)


def _round_up(v, m):
    return ((v + m - 1) // m) * m


def complex_prelu(x, alpha):
    """x: complex array of any shape. alpha: scalar (python float or 0-d array)."""
    orig_shape = x.shape
    # Unavoidable split: Mosaic has no complex-dtype refs.
    # TODO(synk): if Pallas ever accepts complex64 inputs (or bitcast of them),
    # drop the split/merge passes and stream the interleaved buffer directly.
    re = jnp.real(x).astype(jnp.float32)
    im = jnp.imag(x).astype(jnp.float32)
    n = re.size

    re_flat = re.reshape(-1)
    im_flat = im.reshape(-1)

    # Pick the widest lane count that divides n so the reshape is free (no
    # padding copy) and stores stay lane-dense.
    lanes = None
    for cand in _LANE_CHOICES:
        if n % cand == 0:
            lanes = cand
            break
    if lanes is None:
        # Awkward size: minimal pad to the next multiple of 128 lanes only.
        lanes = 128
        pad = (-n) % lanes
        re_flat = jnp.pad(re_flat, (0, pad))
        im_flat = jnp.pad(im_flat, (0, pad))

    rows = re_flat.size // lanes
    re2 = re_flat.reshape(rows, lanes)
    im2 = im_flat.reshape(rows, lanes)

    plane_bytes = rows * lanes * 4
    if plane_bytes <= _SMALL_BYTES:
        # Tiny input: one whole-array block (full-dim exception to (8,128)).
        tile_rows = rows
        grid = (1,)
    else:
        max_tile_rows = max(8, _TARGET_BLOCK_BYTES // (4 * lanes))
        # Aim for >= ~8 grid steps (v7x megacore sharding) while capping each
        # per-plane block at ~2 MiB. Ragged last block handled by Pallas
        # edge-block masking — no slab padding.
        tile_rows = min(max_tile_rows, _round_up(pl.cdiv(rows, 8), 8))
        grid = (pl.cdiv(rows, tile_rows),)

    data_spec = pl.BlockSpec((tile_rows, lanes), lambda i, alpha_sref: (i, 0))
    alpha_arr = jnp.asarray(alpha, dtype=jnp.float32).reshape(1)

    y_re, y_im = pl.pallas_call(
        _prelu_kernel,
        out_shape=(
            jax.ShapeDtypeStruct((rows, lanes), jnp.float32),
            jax.ShapeDtypeStruct((rows, lanes), jnp.float32),
        ),
        grid_spec=pltpu.PrefetchScalarGridSpec(
            num_scalar_prefetch=1,          # alpha lands in SMEM once, up front
            grid=grid,
            in_specs=[data_spec, data_spec],
            out_specs=[data_spec, data_spec],
        ),
        compiler_params=pltpu.CompilerParams(
            dimension_semantics=("parallel",),
            vmem_limit_bytes=_VMEM_LIMIT,
        ),
    )(alpha_arr, re2, im2)

    if re_flat.size != n:
        y_re = y_re.reshape(-1)[:n]
        y_im = y_im.reshape(-1)[:n]
    return jax.lax.complex(y_re.reshape(orig_shape), y_im.reshape(orig_shape))


if __name__ == "__main__":
    key = jax.random.PRNGKey(0)
    kr, ki = jax.random.split(key)
    shape = (2, 4, 16, 16)  # NCHW-style complex input
    x_real = jax.random.normal(kr, shape, dtype=jnp.float32)
    x_imag = jax.random.normal(ki, shape, dtype=jnp.float32)
    x = jax.lax.complex(x_real, x_imag)

    alpha = 0.25  # torch.nn.PReLU default single-parameter init

    fn = jax.jit(complex_prelu)
    y = jax.block_until_ready(fn(x, alpha))

    # Reference check in plain JAX (same semantics as torch PReLU on real/imag).
    def prelu_ref(v):
        return jnp.where(v >= 0, v, alpha * v)

    y_ref = jax.lax.complex(prelu_ref(x_real), prelu_ref(x_imag))
    assert y.shape == shape and y.dtype == jnp.complex64
    assert jnp.allclose(jnp.real(y), jnp.real(y_ref), atol=1e-6)
    assert jnp.allclose(jnp.imag(y), jnp.imag(y_ref), atol=1e-6)

    # Secondary check: size not divisible by 128 exercises the minimal-pad path.
    shape2 = (3, 5, 7)
    xr2 = jax.random.normal(kr, shape2, dtype=jnp.float32)
    xi2 = jax.random.normal(ki, shape2, dtype=jnp.float32)
    x2 = jax.lax.complex(xr2, xi2)
    y2 = jax.block_until_ready(jax.jit(complex_prelu)(x2, alpha))
    y2_ref = jax.lax.complex(prelu_ref(xr2), prelu_ref(xi2))
    assert jnp.allclose(jnp.real(y2), jnp.real(y2_ref), atol=1e-6)
    assert jnp.allclose(jnp.imag(y2), jnp.imag(y2_ref), atol=1e-6)

    print("KERNEL_OK")
</pallas_src>

<mosaic_0001>
module attributes {stable_mosaic.version = 11 : i64} {
  func.func @_prelu_kernel(%arg0: i32, %arg1: memref<1xf32, #tpu.memory_space<smem>>, %arg2: memref<1x2048xf32, #tpu.memory_space<vmem>>, %arg3: memref<1x2048xf32, #tpu.memory_space<vmem>>, %arg4: memref<1x2048xf32, #tpu.memory_space<vmem>>, %arg5: memref<1x2048xf32, #tpu.memory_space<vmem>>) attributes {dimension_semantics = [#tpu.dimension_semantics<parallel>], iteration_bounds = array<i64: 1>, scalar_prefetch = 1 : i64, scratch_operands = 0 : i64, tpu.core_type = #tpu.core_type<tc>, window_params = [{transform_indices = @transform_0, window_bounds = array<i64: 1, 2048>}, {transform_indices = @transform_1, window_bounds = array<i64: 1, 2048>}, {transform_indices = @transform_2, window_bounds = array<i64: 1, 2048>}, {transform_indices = @transform_3, window_bounds = array<i64: 1, 2048>}]} {
    %c0 = arith.constant 0 : index
    %0 = memref.load %arg1[%c0] : memref<1xf32, #tpu.memory_space<smem>>
    %c0_0 = arith.constant 0 : index
    %c0_1 = arith.constant 0 : index
    %1 = vector.load %arg2[%c0_0, %c0_1] : memref<1x2048xf32, #tpu.memory_space<vmem>>, vector<1x2048xf32>
    %c0_2 = arith.constant 0 : index
    %c0_3 = arith.constant 0 : index
    %2 = vector.load %arg3[%c0_2, %c0_3] : memref<1x2048xf32, #tpu.memory_space<vmem>>, vector<1x2048xf32>
    %cst = arith.constant 0.000000e+00 : f32
    %3 = vector.broadcast %cst : f32 to vector<1x2048xf32>
    %4 = arith.cmpf oge, %1, %3 : vector<1x2048xf32>
    %5 = vector.broadcast %0 : f32 to vector<1x2048xf32>
    %6 = arith.mulf %5, %1 : vector<1x2048xf32>
    %7 = arith.select %4, %1, %6 : vector<1x2048xi1>, vector<1x2048xf32>
    %c0_4 = arith.constant 0 : index
    %c0_5 = arith.constant 0 : index
    %8 = vector.load %arg4[%c0_4, %c0_5] : memref<1x2048xf32, #tpu.memory_space<vmem>>, vector<1x2048xf32>
    tpu.vector_store %arg4[%c0_4, %c0_5], %7 {strides = array<i32>} : memref<1x2048xf32, #tpu.memory_space<vmem>>, vector<1x2048xf32>,
    %cst_6 = arith.constant 0.000000e+00 : f32
    %9 = vector.broadcast %cst_6 : f32 to vector<1x2048xf32>
    %10 = arith.cmpf oge, %2, %9 : vector<1x2048xf32>
    %11 = vector.broadcast %0 : f32 to vector<1x2048xf32>
    %12 = arith.mulf %11, %2 : vector<1x2048xf32>
    %13 = arith.select %10, %2, %12 : vector<1x2048xi1>, vector<1x2048xf32>
    %c0_7 = arith.constant 0 : index
    %c0_8 = arith.constant 0 : index
    %14 = vector.load %arg5[%c0_7, %c0_8] : memref<1x2048xf32, #tpu.memory_space<vmem>>, vector<1x2048xf32>
    tpu.vector_store %arg5[%c0_7, %c0_8], %13 {strides = array<i32>} : memref<1x2048xf32, #tpu.memory_space<vmem>>, vector<1x2048xf32>,
    return
  }
  func.func @transform_0(%arg0: i32, %arg1: memref<1xf32, #tpu.memory_space<smem>>) -> (i32, i32) {
    %c0_i32 = arith.constant 0 : i32
    %c0_i32_0 = arith.constant 0 : i32
    return %arg0, %c0_i32 : i32, i32
  }
  func.func @transform_1(%arg0: i32, %arg1: memref<1xf32, #tpu.memory_space<smem>>) -> (i32, i32) {
    %c0_i32 = arith.constant 0 : i32
    %c0_i32_0 = arith.constant 0 : i32
    return %arg0, %c0_i32 : i32, i32
  }
  func.func @transform_2(%arg0: i32, %arg1: memref<1xf32, #tpu.memory_space<smem>>) -> (i32, i32) {
    %c0_i32 = arith.constant 0 : i32
    %c0_i32_0 = arith.constant 0 : i32
    return %arg0, %c0_i32 : i32, i32
  }
  func.func @transform_3(%arg0: i32, %arg1: memref<1xf32, #tpu.memory_space<smem>>) -> (i32, i32) {
    %c0_i32 = arith.constant 0 : i32
    %c0_i32_0 = arith.constant 0 : i32
    return %arg0, %c0_i32 : i32, i32
  }
}

</mosaic_0001>

<bundles_post_ra>
// kernel: custom-call.1
= control target key start
LH: loop header
LB: loop body
LE: loop exit
PB: predicated region body
PF: predicated region fallthrough
CT: control target
= control target key end

     0   :  { %s59_s0 = inlined_call_operand.hbm [shape: c64[2,4,16,16], index: 0, kind: input, shape index: {}]   ;;  %s60_s1 = inlined_call_operand.vmem [shape: f32[2,4,16,16], index: 1, kind: output, shape index: {}]  }
   0x1   :  { %s2_s8 = scalar_lea.hbm %s59_s0, 2048 }
   0x2   :  { %3 = vsyncpa [#allocation0], 0  ;;  %s4_s11 = sshll.u32 %s60_s1, 4  ;;  %s34_s14 = scalar_lea.hbm %s59_s0, 4096  ;;  %s5_s11 = int_to_ptr.vmem [resolvable:$true] %s4_s11 }
   0x3   :  { %p11_p0 = scmp.ne.s32.totalorder %s2_s8, %s34_s14  ;;  %p13_p1 = scmp.lt.u32.totalorder %s2_s8, %s59_s0 }
   0x4   :  { %p14_p2 = scmp.lt.u32.totalorder %s34_s14, %s34_s14  ;;  %p16_p4 = scmp.lt.u32.totalorder %s34_s14, %s2_s8 }
   0x6   :  { %p15_p3 = por %p14_p2, %p13_p1 }
   0x8   :  { %p17_p5 = por %p16_p4, %p15_p3 }
   0xa   :  { %p18_p6 = pnand %p17_p5, %p11_p0 }
   0xc   :  { %21 = shalt.err (!%p18_p6)  }
   0xd   :  { %s22_s17 = scalar_lea.vmem %s5_s11, 2048  ;;  %p27_p8 = scmp.lt.s32.totalorder %s5_s11, %s5_s11 }
   0xe   :  { %p23_p7 = scmp.ne.s32.totalorder %s5_s11, %s22_s17  ;;  %p28_p9 = scmp.lt.s32.totalorder %s22_s17, %s22_s17 }
  0x10   :  { %p29_p10 = por %p28_p9, %p27_p8 }
  0x12   :  { %p30_p11 = pnand %p29_p10, %p23_p7 }
  0x14   :  { %33 = shalt.err (!%p30_p11)  }
  0x15   :  { %7 = dma.hbm_to_vmem [thread:$0]  %s2_s8, 2048, %s5_s11, [#allocation0] }
  0x16   :  { %35 = dma.done.wait [#allocation0], 2048  }
  0x17   :  { %36 = vsyncadd [#allocation0], 4294965248 }
  0x18   :  { %9 = vsyncpa [#allocation0], 1 }

// kernel: custom-call
= control target key start
LH: loop header
LB: loop body
LE: loop exit
PB: predicated region body
PF: predicated region fallthrough
CT: control target
= control target key end

     0   :  { %2 = vsyncpa [#allocation0], 0  ;;  %s61_s0 = inlined_call_operand.hbm [shape: c64[2,4,16,16], index: 0, kind: input, shape index: {}]   ;;  %s62_s1 = inlined_call_operand.vmem [shape: f32[2,4,16,16], index: 1, kind: output, shape index: {}]  }
   0x1   :  { %s3_s8 = sshll.u32 %s62_s1, 4  ;;  %s9_s11 = scalar_lea.hbm %s61_s0, 2048  ;;  %s4_s8 = int_to_ptr.vmem [resolvable:$true] %s3_s8 }
   0x2   :  { %p10_p0 = scmp.ne.s32.totalorder %s61_s0, %s9_s11  ;;  %s11_s16 = scalar_lea.hbm %s61_s0, 4096 }
   0x3   :  { %p12_p1 = scmp.lt.u32.totalorder %s11_s16, %s9_s11  ;;  %p13_p2 = scmp.lt.u32.totalorder %s9_s11, %s61_s0 }
   0x5   :  { %p14_p3 = por %p13_p2, %p12_p1 }
   0x7   :  { %p15_p4 = pnand %p14_p3, %p10_p0 }
   0x9   :  { %18 = shalt.err (!%p15_p4)  }
   0xa   :  { %s19_s1 = scalar_lea.vmem %s4_s8, 2048  ;;  %p24_p6 = scmp.lt.s32.totalorder %s4_s8, %s4_s8 }
   0xb   :  { %p20_p5 = scmp.ne.s32.totalorder %s4_s8, %s19_s1  ;;  %p25_p7 = scmp.lt.s32.totalorder %s19_s1, %s19_s1 }
   0xd   :  { %p26_p8 = por %p25_p7, %p24_p6 }
   0xf   :  { %p27_p9 = pnand %p26_p8, %p20_p5 }
  0x11   :  { %30 = shalt.err (!%p27_p9)  }
  0x12   :  { %6 = dma.hbm_to_vmem [thread:$0]  %s61_s0, 2048, %s4_s8, [#allocation0] }
  0x13   :  { %31 = dma.done.wait [#allocation0], 2048  }
  0x14   :  { %32 = vsyncadd [#allocation0], 4294965248 }
  0x15   :  { %8 = vsyncpa [#allocation0], 1 }

// kernel: custom-call.2
= control target key start
LH: loop header
LB: loop body
LE: loop exit
PB: predicated region body
PF: predicated region fallthrough
CT: control target
= control target key end

     0   :  { %s126_s0 = inlined_call_operand.vmem [shape: f32[2,4,16,16], index: 0, kind: input, shape index: {}]   ;;  %s127_s1 = inlined_call_operand.vmem [shape: f32[2,4,16,16], index: 1, kind: input, shape index: {}]   ;;  %s128_s2 = inlined_call_operand.hbm [shape: c64[2,4,16,16], index: 2, kind: output, shape index: {}]  }
   0x1   :  { %s87_s11 = scalar_lea.hbm %s128_s2, 2048 }
   0x2   :  { %4 = vsyncpa [#allocation0], 0  ;;  %s5_s14 = sshll.u32 %s126_s0, 4  ;;  %s6_s14 = int_to_ptr.vmem [resolvable:$true] %s5_s14 }
   0x3   :  { %s18_s15 = scalar_lea.vmem %s6_s14, 2048  ;;  %p23_p1 = scmp.lt.s32.totalorder %s6_s14, %s6_s14 }
   0x4   :  { %p19_p0 = scmp.ne.s32.totalorder %s6_s14, %s18_s15  ;;  %p24_p2 = scmp.lt.s32.totalorder %s18_s15, %s18_s15 }
   0x6   :  { %p25_p3 = por %p24_p2, %p23_p1 }
   0x8   :  { %p26_p4 = pnand %p25_p3, %p19_p0 }
   0xa   :  { %29 = shalt.err (!%p26_p4)  }
   0xb   :  { %p31_p5 = scmp.ne.s32.totalorder %s128_s2, %s87_s11  ;;  %s32_s0 = scalar_lea.hbm %s128_s2, 4096 }
   0xc   :  { %p33_p6 = scmp.lt.u32.totalorder %s32_s0, %s87_s11  ;;  %p34_p7 = scmp.lt.u32.totalorder %s87_s11, %s128_s2 }
   0xe   :  { %p35_p8 = por %p34_p7, %p33_p6 }
  0x10   :  { %p36_p9 = pnand %p35_p8, %p31_p5 }
  0x12   :  { %39 = shalt.err (!%p36_p9)  }
  0x13   :  { %8 = dma.vmem_to_hbm [thread:$0]  %s6_s14, 2048, %s128_s2, [#allocation0] }
  0x14   :  { %65 = dma.done.wait [#allocation0], 2048  }
  0x15   :  { %66 = vsyncadd [#allocation0], 4294965248 }
  0x16   :  { %10 = vsyncpa [#allocation0], 1 }
  0x17   :  { %11 = vsyncpa [#allocation1], 0  ;;  %s12_s28 = sshll.u32 %s127_s1, 4  ;;  %s13_s28 = int_to_ptr.vmem [resolvable:$true] %s12_s28 }
  0x18   :  { %s40_s29 = scalar_lea.vmem %s13_s28, 2048  ;;  %p45_p11 = scmp.lt.s32.totalorder %s13_s28, %s13_s28 }
  0x19   :  { %p41_p10 = scmp.ne.s32.totalorder %s13_s28, %s40_s29  ;;  %p46_p12 = scmp.lt.s32.totalorder %s40_s29, %s40_s29 }
  0x1b   :  { %p47_p13 = por %p46_p12, %p45_p11 }
  0x1d   :  { %p48_p0 = pnand %p47_p13, %p41_p10 }
  0x1f   :  { %51 = shalt.err (!%p48_p0)  }
  0x20   :  { %p53_p1 = scmp.ne.s32.totalorder %s87_s11, %s32_s0  ;;  %p56_p2 = scmp.lt.u32.totalorder %s32_s0, %s32_s0 }
  0x22   :  { %p57_p3 = por %p56_p2, %p34_p7 }
  0x24   :  { %p59_p4 = por %p57_p3, %p33_p6 }
  0x26   :  { %p60_p5 = pnand %p59_p4, %p53_p1 }
  0x28   :  { %63 = shalt.err (!%p60_p5)  }
  0x29   :  { %15 = dma.vmem_to_hbm [thread:$0]  %s13_s28, 2048, %s87_s11, [#allocation1] }
  0x2a   :  { %67 = dma.done.wait [#allocation1], 2048  }
  0x2b   :  { %68 = vsyncadd [#allocation1], 4294965248 }
  0x2c   :  { %17 = vsyncpa [#allocation1], 1 }

// kernel: complex_prelu.1
= control target key start
LH: loop header
LB: loop body
LE: loop exit
PB: predicated region body
PF: predicated region fallthrough
CT: control target
= control target key end

     0   :  { %s97_s0 = inlined_call_operand.<no memory space> [shape: f32[1], index: 0, kind: input, shape index: {}]   ;;  %s98_s1 = inlined_call_operand.vmem [shape: f32[1,2048], index: 1, kind: input, shape index: {}]   ;;  %s99_s2 = inlined_call_operand.vmem [shape: f32[1,2048], index: 2, kind: input, shape index: {}]   ;;  %s100_s3 = inlined_call_operand.vmem [shape: f32[1,2048], index: 3, kind: output, shape index: {0}]   ;;  %s101_s4 = inlined_call_operand.vmem [shape: f32[1,2048], index: 4, kind: output, shape index: {1}]  }
   0x1   :  { %v16_v0 = vld [vmem:[%s98_s1] sm:$0xff]  ;;  %v22_v1 = vstv %s97_s0  ;;  %v17_v2 = vld [vmem:[%s98_s1 + $0x8] sm:$0xff] }
   0x2   :  { %v18_v3 = vld [vmem:[%s99_s2] sm:$0xff]  ;;  %vm20_vm0 = vcmp.ge.f32.partialorder %v16_v0, 0.0  ;;  %v23_v4 = vmul.f32 %v22_v1, %v16_v0  ;;  %vm21_vm1 = vcmp.ge.f32.partialorder %v17_v2, 0.0  ;;  %v24_v5 = vmul.f32 %v22_v1, %v17_v2  ;;  %v19_v6 = vld [vmem:[%s99_s2 + $0x8] sm:$0xff] }
   0x3   :  { %vm29_vm2 = vcmp.ge.f32.partialorder %v18_v3, 0.0  ;;  %v31_v7 = vmul.f32 %v22_v1, %v18_v3  ;;  %vm30_vm3 = vcmp.ge.f32.partialorder %v19_v6, 0.0  ;;  %v32_v8 = vmul.f32 %v22_v1, %v19_v6 }
   0x4   :  { %v25_v9 = vsel %vm20_vm0, %v16_v0, %v23_v4  ;;  %v26_v10 = vsel %vm21_vm1, %v17_v2, %v24_v5 }
   0x5   :  { %27 = vst [vmem:[%s100_s3] sm:$0xff] %v25_v9  ;;  %28 = vst [vmem:[%s100_s3 + $0x8] sm:$0xff] %v26_v10  ;;  %v33_v11 = vsel %vm29_vm2, %v18_v3, %v31_v7  ;;  %v34_v12 = vsel %vm30_vm3, %v19_v6, %v32_v8 }
   0x6   :  { %35 = vst [vmem:[%s101_s4] sm:$0xff] %v33_v11  ;;  %36 = vst [vmem:[%s101_s4 + $0x8] sm:$0xff] %v34_v12 }

</bundles_post_ra>
